<compile_context>
chip_gen: v7x
topology: tpu7x:2x2x1
jax: 0.10.0
libtpu: 0.0.40
codegen_flags: <defaults>
</compile_context>

<pallas_src>
import functools

import jax
import jax.numpy as jnp
from jax import lax
from jax.experimental import pallas as pl
from jax.experimental.pallas import tpu as pltpu


def _dwsep_kernel(x_ref, wdw_ref, b1_ref, wpw_ref, b2_ref, out_ref, *, width):
    """Depthwise(3x3)+BN+ReLU+pointwise(1x1)+BN for one (bb*Cin, H*W) slab.

    x_ref   : (BCin, H*W)     f32  bb images, channels stacked on sublanes
    wdw_ref : (9, BCin, 1)    f32  depthwise taps (BN1 scale folded, tiled over bb)
    b1_ref  : (BCin, 1)       f32  folded BN1 bias (tiled over bb)
    wpw_ref : (BCout, BCin)   f32  block-diagonal pointwise weight (BN2 scale folded)
    b2_ref  : (BCout, 1)      f32  folded BN2 bias (tiled over bb)
    out_ref : (BCout, H*W)    f32
    """
    bc, hw = x_ref.shape
    w = width

    x = x_ref[...]                                            # (BCin, HW)

    # Edge masks for the flattened-spatial shifted taps.  Hoisted out of the
    # tap loop and broadcast to full shape once (JAX does not CSE
    # broadcast_in_dim, so broadcasting inside the loop would re-materialize).
    pos = lax.broadcasted_iota(jnp.int32, (1, hw), 1)
    col = pos % w
    has_up = pos >= w                   # pixel is not in the top row
    has_down = pos < hw - w             # pixel is not in the bottom row
    has_left = col > 0                  # pixel is not in the leftmost column
    has_right = col < (w - 1)           # pixel is not in the rightmost column
    row_mask = {-1: has_up, 0: None, 1: has_down}
    col_mask = {-1: has_left, 0: None, 1: has_right}

    def _full(m):
        return jnp.broadcast_to(m, (bc, hw))

    tap_masks = {}
    for dy in (-1, 0, 1):
        for dx in (-1, 0, 1):
            rm, cm = row_mask[dy], col_mask[dx]
            if rm is None and cm is None:
                tap_masks[(dy, dx)] = None
            elif rm is None:
                tap_masks[(dy, dx)] = _full(cm)
            elif cm is None:
                tap_masks[(dy, dx)] = _full(rm)
            else:
                tap_masks[(dy, dx)] = _full(jnp.logical_and(rm, cm))

    # Depthwise 3x3 conv as 9 shifted multiply-accumulates.  The shifts are
    # static lane rotations (XLU - idle otherwise in this kernel); wrapped
    # lanes (out-of-image neighbours) are masked to zero.  BN1 bias is folded
    # into the accumulator init.
    acc = jnp.broadcast_to(b1_ref[...], (bc, hw))
    taps = [(dy, dx) for dy in (-1, 0, 1) for dx in (-1, 0, 1)]
    for t, (dy, dx) in enumerate(taps):
        off = dy * w + dx
        # want shifted[p] = x[(p + off) % hw]  ->  roll by -off
        shifted = x if off == 0 else pltpu.roll(x, shift=(-off) % hw, axis=1)
        mask = tap_masks[(dy, dx)]
        if mask is not None:
            shifted = jnp.where(mask, shifted, 0.0)
        acc = acc + shifted * wdw_ref[t]                      # (BCin,1) lane-bcast

    # ReLU.
    y = jnp.maximum(acc, 0.0)

    # Pointwise 1x1 conv on the MXU: block-diagonal weight keeps the bb
    # images stacked on sublanes, so the whole slab is one matmul with a
    # lane-dense N = H*W.  f32 in / f32 accumulation (no bf16 cast).
    z = jnp.dot(wpw_ref[...], y, preferred_element_type=jnp.float32)
    out_ref[...] = z + b2_ref[...]


def _pick_batch_block(n):
    """Largest block-batch <= 8 that divides N (fills f32 sublane tiles and
    amortizes the ~0.35 us per-grid-step overhead)."""
    for cand in range(min(n, 8), 0, -1):
        if n % cand == 0:
            return cand
    return 1


def depthwise_conv(x_nchw, w_dw, w_pw, bn1, bn2, *, eps=1e-5):
    """Forward pass of DepthwiseConv (eval-mode BN, stride=1).

    x_nchw: (N, Cin, H, W) float32
    w_dw  : (Cin, 1, 3, 3)    PyTorch depthwise conv weight
    w_pw  : (Cout, Cin, 1, 1) PyTorch pointwise conv weight
    bn1   : (gamma, beta, running_mean, running_var), each (Cin,)
    bn2   : (gamma, beta, running_mean, running_var), each (Cout,)
    returns (N, Cout, H, W) float32
    """
    n, cin, h, w = x_nchw.shape
    cout = w_pw.shape[0]
    hw = h * w

    g1, b1, m1, v1 = bn1
    g2, b2, m2, v2 = bn2
    inv1 = g1 / jnp.sqrt(v1 + eps)                  # (Cin,)
    inv2 = g2 / jnp.sqrt(v2 + eps)                  # (Cout,)

    bb = _pick_batch_block(n)
    bc_in = bb * cin
    bc_out = bb * cout

    # Fold BN scales into the conv weights (tiny one-time ops) and tile the
    # per-channel params across the bb images stacked inside one block.
    wdw_f = w_dw[:, 0].astype(jnp.float32) * inv1[:, None, None]       # (Cin,3,3)
    wtaps = jnp.transpose(wdw_f.reshape(cin, 9), (1, 0))               # (9,Cin)
    wtaps = jnp.tile(wtaps, (1, bb)).reshape(9, bc_in, 1)              # (9,bb*Cin,1)
    o1 = jnp.tile((b1 - m1 * inv1).reshape(cin, 1).astype(jnp.float32),
                  (bb, 1))                                             # (bb*Cin,1)
    wpw_f = w_pw[:, :, 0, 0].astype(jnp.float32) * inv2[:, None]       # (Cout,Cin)
    wpw_blk = jnp.kron(jnp.eye(bb, dtype=jnp.float32), wpw_f)          # (bb*Cout,bb*Cin)
    o2 = jnp.tile((b2 - m2 * inv2).reshape(cout, 1).astype(jnp.float32),
                  (bb, 1))                                             # (bb*Cout,1)

    # Free reshape: NCHW stays contiguous; channels of successive images
    # stack along the sublane axis, flattened spatial lives on lanes.
    x_flat = x_nchw.reshape(n * cin, hw)

    kernel = functools.partial(_dwsep_kernel, width=w)

    cost = pl.CostEstimate(
        flops=n * (2 * 9 * hw * cin + 2 * hw * cin * cout),
        transcendentals=0,
        bytes_accessed=(x_flat.size + n * cout * hw
                        + wtaps.size + o1.size + wpw_blk.size + o2.size) * 4,
    )

    out_flat = pl.pallas_call(
        kernel,
        out_shape=jax.ShapeDtypeStruct((n * cout, hw), jnp.float32),
        grid_spec=pltpu.PrefetchScalarGridSpec(
            num_scalar_prefetch=0,
            grid=(n // bb,),
            in_specs=[
                pl.BlockSpec((bc_in, hw), lambda i: (i, 0)),
                pl.BlockSpec((9, bc_in, 1), lambda i: (0, 0, 0)),
                pl.BlockSpec((bc_in, 1), lambda i: (0, 0)),
                pl.BlockSpec((bc_out, bc_in), lambda i: (0, 0)),
                pl.BlockSpec((bc_out, 1), lambda i: (0, 0)),
            ],
            out_specs=pl.BlockSpec((bc_out, hw), lambda i: (i, 0)),
        ),
        compiler_params=pltpu.CompilerParams(
            dimension_semantics=("parallel",)),
        cost_estimate=cost,
    )(x_flat, wtaps, o1, wpw_blk, o2)

    return out_flat.reshape(n, cout, h, w)


def _ref_forward(x, w_dw, w_pw, bn1, bn2, eps=1e-5):
    """Pure-JAX reference (matches PyTorch eval-mode forward), full f32."""
    g1, b1, m1, v1 = bn1
    g2, b2, m2, v2 = bn2
    Cin = x.shape[1]
    out = lax.conv_general_dilated(
        x, w_dw, window_strides=(1, 1), padding=((1, 1), (1, 1)),
        dimension_numbers=("NCHW", "OIHW", "NCHW"),
        feature_group_count=Cin, precision=lax.Precision.HIGHEST)
    out = (out - m1[None, :, None, None]) / jnp.sqrt(v1 + eps)[None, :, None, None] \
        * g1[None, :, None, None] + b1[None, :, None, None]
    out = jnp.maximum(out, 0.0)
    out = lax.conv_general_dilated(
        out, w_pw, window_strides=(1, 1), padding="VALID",
        dimension_numbers=("NCHW", "OIHW", "NCHW"),
        precision=lax.Precision.HIGHEST)
    out = (out - m2[None, :, None, None]) / jnp.sqrt(v2 + eps)[None, :, None, None] \
        * g2[None, :, None, None] + b2[None, :, None, None]
    return out


if __name__ == "__main__":
    N, Cin, Cout, H, W = 2, 4, 8, 16, 16

    key = jax.random.PRNGKey(0)
    (kx, kdw, kpw,
     kg1, kb1, km1, kv1,
     kg2, kb2, km2, kv2) = jax.random.split(key, 11)

    x = jax.random.normal(kx, (N, Cin, H, W), jnp.float32)
    w_dw = 0.3 * jax.random.normal(kdw, (Cin, 1, 3, 3), jnp.float32)
    w_pw = 0.3 * jax.random.normal(kpw, (Cout, Cin, 1, 1), jnp.float32)

    bn1 = (jax.random.uniform(kg1, (Cin,), jnp.float32, 0.5, 1.5),
           0.1 * jax.random.normal(kb1, (Cin,), jnp.float32),
           0.1 * jax.random.normal(km1, (Cin,), jnp.float32),
           jax.random.uniform(kv1, (Cin,), jnp.float32, 0.5, 1.5))
    bn2 = (jax.random.uniform(kg2, (Cout,), jnp.float32, 0.5, 1.5),
           0.1 * jax.random.normal(kb2, (Cout,), jnp.float32),
           0.1 * jax.random.normal(km2, (Cout,), jnp.float32),
           jax.random.uniform(kv2, (Cout,), jnp.float32, 0.5, 1.5))

    out = jax.jit(depthwise_conv)(x, w_dw, w_pw, bn1, bn2)
    jax.block_until_ready(out)

    ref = _ref_forward(x, w_dw, w_pw, bn1, bn2)
    assert out.shape == (N, Cout, H, W), out.shape
    # Depthwise path is exact f32 on the VPU; the 1x1 conv runs on the MXU
    # with f32 inputs / f32 accumulation, so tolerance can be modest.
    max_err = float(jnp.max(jnp.abs(out - ref)))
    assert jnp.allclose(out, ref, atol=2e-2, rtol=2e-2), max_err

    print("KERNEL_OK")
</pallas_src>

<mosaic_0001>
module attributes {stable_mosaic.version = 11 : i64} {
  func.func @_dwsep_kernel(%arg0: i32, %arg1: memref<8x256xf32, #tpu.memory_space<vmem>>, %arg2: memref<9x8x1xf32, #tpu.memory_space<vmem>>, %arg3: memref<8x1xf32, #tpu.memory_space<vmem>>, %arg4: memref<16x8xf32, #tpu.memory_space<vmem>>, %arg5: memref<16x1xf32, #tpu.memory_space<vmem>>, %arg6: memref<16x256xf32, #tpu.memory_space<vmem>>) attributes {dimension_semantics = [#tpu.dimension_semantics<parallel>], iteration_bounds = array<i64: 1>, scalar_prefetch = 0 : i64, scratch_operands = 0 : i64, tpu.core_type = #tpu.core_type<tc>, window_params = [{transform_indices = @transform_0, window_bounds = array<i64: 8, 256>}, {pipeline_mode = #tpu.pipeline_mode<synchronous>, transform_indices = @transform_1, window_bounds = array<i64: 9, 8, 1>}, {pipeline_mode = #tpu.pipeline_mode<synchronous>, transform_indices = @transform_2, window_bounds = array<i64: 8, 1>}, {pipeline_mode = #tpu.pipeline_mode<synchronous>, transform_indices = @transform_3, window_bounds = array<i64: 16, 8>}, {pipeline_mode = #tpu.pipeline_mode<synchronous>, transform_indices = @transform_4, window_bounds = array<i64: 16, 1>}, {transform_indices = @transform_5, window_bounds = array<i64: 16, 256>}]} {
    %c0 = arith.constant 0 : index
    %c0_0 = arith.constant 0 : index
    %0 = vector.load %arg1[%c0, %c0_0] : memref<8x256xf32, #tpu.memory_space<vmem>>, vector<8x256xf32>
    %1 = tpu.iota {dimensions = array<i32: 1>} : vector<1x256xi32>
    %c16_i32 = arith.constant 16 : i32
    %c0_i32 = arith.constant 0 : i32
    %2 = arith.cmpi eq, %c16_i32, %c0_i32 : i32
    %c1_i32 = arith.constant 1 : i32
    %3 = arith.select %2, %c1_i32, %c16_i32 : i32
    %4 = vector.broadcast %3 : i32 to vector<1x256xi32>
    %5 = arith.remsi %1, %4 : vector<1x256xi32>
    %c0_i32_1 = arith.constant 0 : i32
    %6 = vector.broadcast %c0_i32_1 : i32 to vector<1x256xi32>
    %7 = arith.cmpi ne, %5, %6 : vector<1x256xi32>
    %c0_i32_2 = arith.constant 0 : i32
    %8 = vector.broadcast %c0_i32_2 : i32 to vector<1x256xi32>
    %9 = arith.cmpi slt, %5, %8 : vector<1x256xi32>
    %c0_i32_3 = arith.constant 0 : i32
    %10 = arith.cmpi slt, %3, %c0_i32_3 : i32
    %11 = vector.broadcast %10 : i1 to vector<1x256xi1>
    %12 = vector.broadcast %11 : vector<1x256xi1> to vector<1x256xi1>
    %13 = arith.xori %9, %12 : vector<1x256xi1>
    %14 = arith.andi %13, %7 : vector<1x256xi1>
    %15 = vector.broadcast %3 : i32 to vector<1x256xi32>
    %16 = arith.addi %5, %15 : vector<1x256xi32>
    %17 = arith.select %14, %16, %5 : vector<1x256xi1>, vector<1x256xi32>
    %c16_i32_4 = arith.constant 16 : i32
    %18 = vector.broadcast %c16_i32_4 : i32 to vector<1x256xi32>
    %19 = arith.cmpi sge, %1, %18 : vector<1x256xi32>
    %c240_i32 = arith.constant 240 : i32
    %20 = vector.broadcast %c240_i32 : i32 to vector<1x256xi32>
    %21 = arith.cmpi slt, %1, %20 : vector<1x256xi32>
    %c0_i32_5 = arith.constant 0 : i32
    %22 = vector.broadcast %c0_i32_5 : i32 to vector<1x256xi32>
    %23 = arith.cmpi sgt, %17, %22 : vector<1x256xi32>
    %c15_i32 = arith.constant 15 : i32
    %24 = vector.broadcast %c15_i32 : i32 to vector<1x256xi32>
    %25 = arith.cmpi slt, %17, %24 : vector<1x256xi32>
    %26 = arith.andi %19, %23 : vector<1x256xi1>
    %27 = vector.shape_cast %26 : vector<1x256xi1> to vector<1x256xi1>
    %28 = vector.broadcast %27 : vector<1x256xi1> to vector<8x256xi1>
    %29 = vector.shape_cast %19 : vector<1x256xi1> to vector<1x256xi1>
    %30 = vector.broadcast %29 : vector<1x256xi1> to vector<8x256xi1>
    %31 = arith.andi %19, %25 : vector<1x256xi1>
    %32 = vector.shape_cast %31 : vector<1x256xi1> to vector<1x256xi1>
    %33 = vector.broadcast %32 : vector<1x256xi1> to vector<8x256xi1>
    %34 = vector.shape_cast %23 : vector<1x256xi1> to vector<1x256xi1>
    %35 = vector.broadcast %34 : vector<1x256xi1> to vector<8x256xi1>
    %36 = vector.shape_cast %25 : vector<1x256xi1> to vector<1x256xi1>
    %37 = vector.broadcast %36 : vector<1x256xi1> to vector<8x256xi1>
    %38 = arith.andi %21, %23 : vector<1x256xi1>
    %39 = vector.shape_cast %38 : vector<1x256xi1> to vector<1x256xi1>
    %40 = vector.broadcast %39 : vector<1x256xi1> to vector<8x256xi1>
    %41 = vector.shape_cast %21 : vector<1x256xi1> to vector<1x256xi1>
    %42 = vector.broadcast %41 : vector<1x256xi1> to vector<8x256xi1>
    %43 = arith.andi %21, %25 : vector<1x256xi1>
    %44 = vector.shape_cast %43 : vector<1x256xi1> to vector<1x256xi1>
    %45 = vector.broadcast %44 : vector<1x256xi1> to vector<8x256xi1>
    %c0_6 = arith.constant 0 : index
    %c0_7 = arith.constant 0 : index
    %46 = vector.load %arg3[%c0_6, %c0_7] : memref<8x1xf32, #tpu.memory_space<vmem>>, vector<8x1xf32>
    %47 = vector.shape_cast %46 : vector<8x1xf32> to vector<8x1xf32>
    %48 = vector.broadcast %47 : vector<8x1xf32> to vector<8x256xf32>
    %c17_i32 = arith.constant 17 : i32
    %49 = tpu.dynamic_rotate %0 by %c17_i32 dim 1 : vector<8x256xf32>, i32 -> vector<8x256xf32>
    %cst = arith.constant 0.000000e+00 : f32
    %50 = vector.broadcast %cst : f32 to vector<8x256xf32>
    %51 = arith.select %28, %49, %50 : vector<8x256xi1>, vector<8x256xf32>
    %c0_8 = arith.constant 0 : index
    %c0_9 = arith.constant 0 : index
    %c0_10 = arith.constant 0 : index
    %52 = vector.load %arg2[%c0_8, %c0_9, %c0_10] : memref<9x8x1xf32, #tpu.memory_space<vmem>>, vector<1x8x1xf32>
    %53 = vector.shape_cast %52 : vector<1x8x1xf32> to vector<8x1xf32>
    %54 = vector.broadcast %53 : vector<8x1xf32> to vector<8x256xf32>
    %55 = arith.mulf %51, %54 : vector<8x256xf32>
    %56 = arith.addf %48, %55 : vector<8x256xf32>
    %c16_i32_11 = arith.constant 16 : i32
    %57 = tpu.dynamic_rotate %0 by %c16_i32_11 dim 1 : vector<8x256xf32>, i32 -> vector<8x256xf32>
    %cst_12 = arith.constant 0.000000e+00 : f32
    %58 = vector.broadcast %cst_12 : f32 to vector<8x256xf32>
    %59 = arith.select %30, %57, %58 : vector<8x256xi1>, vector<8x256xf32>
    %c1 = arith.constant 1 : index
    %c0_13 = arith.constant 0 : index
    %c0_14 = arith.constant 0 : index
    %60 = vector.load %arg2[%c1, %c0_13, %c0_14] : memref<9x8x1xf32, #tpu.memory_space<vmem>>, vector<1x8x1xf32>
    %61 = vector.shape_cast %60 : vector<1x8x1xf32> to vector<8x1xf32>
    %62 = vector.broadcast %61 : vector<8x1xf32> to vector<8x256xf32>
    %63 = arith.mulf %59, %62 : vector<8x256xf32>
    %64 = arith.addf %56, %63 : vector<8x256xf32>
    %c15_i32_15 = arith.constant 15 : i32
    %65 = tpu.dynamic_rotate %0 by %c15_i32_15 dim 1 : vector<8x256xf32>, i32 -> vector<8x256xf32>
    %cst_16 = arith.constant 0.000000e+00 : f32
    %66 = vector.broadcast %cst_16 : f32 to vector<8x256xf32>
    %67 = arith.select %33, %65, %66 : vector<8x256xi1>, vector<8x256xf32>
    %c2 = arith.constant 2 : index
    %c0_17 = arith.constant 0 : index
    %c0_18 = arith.constant 0 : index
    %68 = vector.load %arg2[%c2, %c0_17, %c0_18] : memref<9x8x1xf32, #tpu.memory_space<vmem>>, vector<1x8x1xf32>
    %69 = vector.shape_cast %68 : vector<1x8x1xf32> to vector<8x1xf32>
    %70 = vector.broadcast %69 : vector<8x1xf32> to vector<8x256xf32>
    %71 = arith.mulf %67, %70 : vector<8x256xf32>
    %72 = arith.addf %64, %71 : vector<8x256xf32>
    %c1_i32_19 = arith.constant 1 : i32
    %73 = tpu.dynamic_rotate %0 by %c1_i32_19 dim 1 : vector<8x256xf32>, i32 -> vector<8x256xf32>
    %cst_20 = arith.constant 0.000000e+00 : f32
    %74 = vector.broadcast %cst_20 : f32 to vector<8x256xf32>
    %75 = arith.select %35, %73, %74 : vector<8x256xi1>, vector<8x256xf32>
    %c3 = arith.constant 3 : index
    %c0_21 = arith.constant 0 : index
    %c0_22 = arith.constant 0 : index
    %76 = vector.load %arg2[%c3, %c0_21, %c0_22] : memref<9x8x1xf32, #tpu.memory_space<vmem>>, vector<1x8x1xf32>
    %77 = vector.shape_cast %76 : vector<1x8x1xf32> to vector<8x1xf32>
    %78 = vector.broadcast %77 : vector<8x1xf32> to vector<8x256xf32>
    %79 = arith.mulf %75, %78 : vector<8x256xf32>
    %80 = arith.addf %72, %79 : vector<8x256xf32>
    %c4 = arith.constant 4 : index
    %c0_23 = arith.constant 0 : index
    %c0_24 = arith.constant 0 : index
    %81 = vector.load %arg2[%c4, %c0_23, %c0_24] : memref<9x8x1xf32, #tpu.memory_space<vmem>>, vector<1x8x1xf32>
    %82 = vector.shape_cast %81 : vector<1x8x1xf32> to vector<8x1xf32>
    %83 = vector.broadcast %82 : vector<8x1xf32> to vector<8x256xf32>
    %84 = arith.mulf %0, %83 : vector<8x256xf32>
    %85 = arith.addf %80, %84 : vector<8x256xf32>
    %c255_i32 = arith.constant 255 : i32
    %86 = tpu.dynamic_rotate %0 by %c255_i32 dim 1 : vector<8x256xf32>, i32 -> vector<8x256xf32>
    %cst_25 = arith.constant 0.000000e+00 : f32
    %87 = vector.broadcast %cst_25 : f32 to vector<8x256xf32>
    %88 = arith.select %37, %86, %87 : vector<8x256xi1>, vector<8x256xf32>
    %c5 = arith.constant 5 : index
    %c0_26 = arith.constant 0 : index
    %c0_27 = arith.constant 0 : index
    %89 = vector.load %arg2[%c5, %c0_26, %c0_27] : memref<9x8x1xf32, #tpu.memory_space<vmem>>, vector<1x8x1xf32>
    %90 = vector.shape_cast %89 : vector<1x8x1xf32> to vector<8x1xf32>
    %91 = vector.broadcast %90 : vector<8x1xf32> to vector<8x256xf32>
    %92 = arith.mulf %88, %91 : vector<8x256xf32>
    %93 = arith.addf %85, %92 : vector<8x256xf32>
    %c241_i32 = arith.constant 241 : i32
    %94 = tpu.dynamic_rotate %0 by %c241_i32 dim 1 : vector<8x256xf32>, i32 -> vector<8x256xf32>
    %cst_28 = arith.constant 0.000000e+00 : f32
    %95 = vector.broadcast %cst_28 : f32 to vector<8x256xf32>
    %96 = arith.select %40, %94, %95 : vector<8x256xi1>, vector<8x256xf32>
    %c6 = arith.constant 6 : index
    %c0_29 = arith.constant 0 : index
    %c0_30 = arith.constant 0 : index
    %97 = vector.load %arg2[%c6, %c0_29, %c0_30] : memref<9x8x1xf32, #tpu.memory_space<vmem>>, vector<1x8x1xf32>
    %98 = vector.shape_cast %97 : vector<1x8x1xf32> to vector<8x1xf32>
    %99 = vector.broadcast %98 : vector<8x1xf32> to vector<8x256xf32>
    %100 = arith.mulf %96, %99 : vector<8x256xf32>
    %101 = arith.addf %93, %100 : vector<8x256xf32>
    %c240_i32_31 = arith.constant 240 : i32
    %102 = tpu.dynamic_rotate %0 by %c240_i32_31 dim 1 : vector<8x256xf32>, i32 -> vector<8x256xf32>
    %cst_32 = arith.constant 0.000000e+00 : f32
    %103 = vector.broadcast %cst_32 : f32 to vector<8x256xf32>
    %104 = arith.select %42, %102, %103 : vector<8x256xi1>, vector<8x256xf32>
    %c7 = arith.constant 7 : index
    %c0_33 = arith.constant 0 : index
    %c0_34 = arith.constant 0 : index
    %105 = vector.load %arg2[%c7, %c0_33, %c0_34] : memref<9x8x1xf32, #tpu.memory_space<vmem>>, vector<1x8x1xf32>
    %106 = vector.shape_cast %105 : vector<1x8x1xf32> to vector<8x1xf32>
    %107 = vector.broadcast %106 : vector<8x1xf32> to vector<8x256xf32>
    %108 = arith.mulf %104, %107 : vector<8x256xf32>
    %109 = arith.addf %101, %108 : vector<8x256xf32>
    %c239_i32 = arith.constant 239 : i32
    %110 = tpu.dynamic_rotate %0 by %c239_i32 dim 1 : vector<8x256xf32>, i32 -> vector<8x256xf32>
    %cst_35 = arith.constant 0.000000e+00 : f32
    %111 = vector.broadcast %cst_35 : f32 to vector<8x256xf32>
    %112 = arith.select %45, %110, %111 : vector<8x256xi1>, vector<8x256xf32>
    %c8 = arith.constant 8 : index
    %c0_36 = arith.constant 0 : index
    %c0_37 = arith.constant 0 : index
    %113 = vector.load %arg2[%c8, %c0_36, %c0_37] : memref<9x8x1xf32, #tpu.memory_space<vmem>>, vector<1x8x1xf32>
    %114 = vector.shape_cast %113 : vector<1x8x1xf32> to vector<8x1xf32>
    %115 = vector.broadcast %114 : vector<8x1xf32> to vector<8x256xf32>
    %116 = arith.mulf %112, %115 : vector<8x256xf32>
    %117 = arith.addf %109, %116 : vector<8x256xf32>
    %cst_38 = arith.constant 0.000000e+00 : f32
    %118 = vector.broadcast %cst_38 : f32 to vector<8x256xf32>
    %119 = arith.maximumf %117, %118 : vector<8x256xf32>
    %c0_39 = arith.constant 0 : index
    %c0_40 = arith.constant 0 : index
    %120 = vector.load %arg4[%c0_39, %c0_40] : memref<16x8xf32, #tpu.memory_space<vmem>>, vector<16x8xf32>
    %cst_41 = arith.constant dense<0.000000e+00> : vector<16x256xf32>
    %121 = tpu.matmul %120, %119, %cst_41 {dimension_numbers = #tpu.dot_dimension_numbers<[1], [0], [0], [1], [0, 0, 1, 1], [], []>} : vector<16x8xf32>, vector<8x256xf32>, vector<16x256xf32> -> vector<16x256xf32>
    %c0_42 = arith.constant 0 : index
    %c0_43 = arith.constant 0 : index
    %122 = vector.load %arg5[%c0_42, %c0_43] : memref<16x1xf32, #tpu.memory_space<vmem>>, vector<16x1xf32>
    %123 = vector.broadcast %122 : vector<16x1xf32> to vector<16x256xf32>
    %124 = arith.addf %121, %123 : vector<16x256xf32>
    %c0_44 = arith.constant 0 : index
    %c0_45 = arith.constant 0 : index
    %125 = vector.load %arg6[%c0_44, %c0_45] : memref<16x256xf32, #tpu.memory_space<vmem>>, vector<16x256xf32>
    tpu.vector_store %arg6[%c0_44, %c0_45], %124 {strides = array<i32>} : memref<16x256xf32, #tpu.memory_space<vmem>>, vector<16x256xf32>,
    return
  }
  func.func @transform_0(%arg0: i32) -> (i32, i32) {
    %c0_i32 = arith.constant 0 : i32
    %c0_i32_0 = arith.constant 0 : i32
    return %arg0, %c0_i32 : i32, i32
  }
  func.func @transform_1(%arg0: i32) -> (i32, i32, i32) {
    %c0_i32 = arith.constant 0 : i32
    %c0_i32_0 = arith.constant 0 : i32
    %c0_i32_1 = arith.constant 0 : i32
    %c0_i32_2 = arith.constant 0 : i32
    return %c0_i32, %c0_i32_0, %c0_i32_1 : i32, i32, i32
  }
  func.func @transform_2(%arg0: i32) -> (i32, i32) {
    %c0_i32 = arith.constant 0 : i32
    %c0_i32_0 = arith.constant 0 : i32
    %c0_i32_1 = arith.constant 0 : i32
    return %c0_i32, %c0_i32_0 : i32, i32
  }
  func.func @transform_3(%arg0: i32) -> (i32, i32) {
    %c0_i32 = arith.constant 0 : i32
    %c0_i32_0 = arith.constant 0 : i32
    %c0_i32_1 = arith.constant 0 : i32
    return %c0_i32, %c0_i32_0 : i32, i32
  }
  func.func @transform_4(%arg0: i32) -> (i32, i32) {
    %c0_i32 = arith.constant 0 : i32
    %c0_i32_0 = arith.constant 0 : i32
    %c0_i32_1 = arith.constant 0 : i32
    return %c0_i32, %c0_i32_0 : i32, i32
  }
  func.func @transform_5(%arg0: i32) -> (i32, i32) {
    %c0_i32 = arith.constant 0 : i32
    %c0_i32_0 = arith.constant 0 : i32
    return %arg0, %c0_i32 : i32, i32
  }
}

</mosaic_0001>

<bundles_post_ra>
// kernel: depthwise_conv.1
= control target key start
LH: loop header
LB: loop body
LE: loop exit
PB: predicated region body
PF: predicated region fallthrough
CT: control target
= control target key end

     0   :  { %v405_v0 = vmov 0   ;;  %s406_s30 = smov 17   ;;  %s409_s12 = smov 1   ;;  %v414_v15 = vmov 0.0   ;;  %v22_v21 = vlaneseq  ;;  %s622_s1 = inlined_call_operand.vmem [shape: f32[9,8,1], index: 1, kind: input, shape index: {}]   ;;  %s623_s2 = inlined_call_operand.vmem [shape: f32[8,1], index: 2, kind: input, shape index: {}]   ;;  %s624_s0 = inlined_call_operand.vmem [shape: f32[8,256], index: 0, kind: input, shape index: {}]   ;;  %s625_s4 = inlined_call_operand.vmem [shape: f32[16,1], index: 4, kind: input, shape index: {}]   ;;  %s626_s3 = inlined_call_operand.vmem [shape: f32[16,8], index: 3, kind: input, shape index: {}]   ;;  %s627_s5 = inlined_call_operand.vmem [shape: f32[16,256], index: 5, kind: output, shape index: {}]  }
   0x1   :  { %404 = vset.pattern.permute.xlu1 %v405_v0  ;;  %403 = vset.pattern.permute.xlu0 %v405_v0  ;;  %v381_v1 = vld [vmem:[%s622_s1 + $0x8] sm:$0xff]  ;;  %v112_v2 = vld [vmem:[%s622_s1] sm:$0xff]  ;;  %v382_v3 = vld [vmem:[%s622_s1 + $0x10] sm:$0xff]  ;;  %s410_s17 = smov 127   ;;  %s411_s20 = smov 113  }
   0x2   :  { %135 = vperm.xlu1 %404, %v381_v1   ;;  %115 = vperm.xlu0 %403, %v112_v2   ;;  %v97_v4 = vld [vmem:[%s623_s2] sm:$0xff]  ;;  %v460_v5 = vld [vmem:[%s624_s0 + $0x8] sm:$0xff]  ;;  %v383_v7 = vld [vmem:[%s622_s1 + $0x18] sm:$0xff]  ;;  %s407_s2 = smov 16   ;;  %s412_s21 = smov 112   ;;  %v507_v23 = vand.u32 127, %v22_v21 }
   0x3   :  { %v465_v6 = vld [vmem:[%s624_s0] sm:$0xff]  ;;  %s408_s0 = smov 15   ;;  %v385_v9 = vld [vmem:[%s622_s1 + $0x28] sm:$0xff]  ;;  %v386_v10 = vld [vmem:[%s622_s1 + $0x30] sm:$0xff]  ;;  %s413_s22 = smov 111   ;;  %360 = vmatprep.mubr.f32.mxu0 %v414_v15  ;;  %366 = vmatprep.mubr.f32.mxu1 %v414_v15 }
   0x4   :  { %v384_v8 = vld [vmem:[%s622_s1 + $0x20] sm:$0xff]  ;;  %v387_v11 = vld [vmem:[%s622_s1 + $0x38] sm:$0xff]  ;;  %v278_v13 = vld [vmem:[%s625_s4 + $0x8] sm:$0xff]  ;;  %v510_v26 = vadd.s32 128, %v507_v23  ;;  %v29_v27 = vand.u32 15, %v507_v23  ;;  %vm49_vm0 = vcmp.ge.s32.totalorder %v507_v23, 16 }
   0x5   :  { %v388_v12 = vld [vmem:[%s622_s1 + $0x40] sm:$0xff]  ;;  %vm107_vm2 = vcmp.lt.s32.totalorder %v507_v23, 17  ;;  %vm126_vm3 = vcmp.lt.s32.totalorder %v507_v23, 16  ;;  %vm146_vm7 = vcmp.lt.s32.totalorder %v507_v23, 15  ;;  %vm166_vm8 = vcmp.lt.s32.totalorder %v507_v23, 1 }
   0x6   :  { %155 = vperm.xlu1 %404, %v382_v3   ;;  %100 = vperm.xlu0 %403, %v97_v4   ;;  %v277_v14 = vld [vmem:[%s625_s4] sm:$0xff]  ;;  %v36_v30 = vand.u32 15, %v510_v26  ;;  %vm517_vm1 = vcmp.gt.s32.totalorder %v29_v27, 0  ;;  %vm535_vm6 = vcmp.lt.s32.totalorder %v29_v27, 15  ;;  %vm197_vm11 = vcmp.lt.s32.totalorder %v507_v23, 127 }
   0x7   :  { %vm527_vm4 = vmand %vm49_vm0, %vm517_vm1  ;;  %vm52_vm12 = vcmp.lt.s32.totalorder %v510_v26, 240  ;;  %vm217_vm13 = vcmp.lt.s32.totalorder %v507_v23, 113  ;;  %vm237_vm15 = vcmp.lt.s32.totalorder %v507_v23, 112  ;;  %v275_v26 = vld [vmem:[%s626_s3] sm:$0xff] }
   0x8   :  { %vm531_vm5 = vcmp.gt.s32.totalorder %v36_v30, 0  ;;  %vm551_vm9 = vmand %vm49_vm0, %vm535_vm6  ;;  %vm557_vm10 = vcmp.lt.s32.totalorder %v36_v30, 15 }
   0x9   :  { %vm580_vm14 = vmand %vm52_vm12, %vm531_vm5 }
   0xa   :  { %105 = vrot.lane.b32.xlu1 %v460_v5, %s406_s30  ;;  %103 = vrot.lane.b32.xlu0 %v465_v6, %s406_s30 }
   0xe   :  { %122 = vrot.lane.b32.xlu1 %v465_v6, %s407_s2  ;;  %175 = vperm.xlu0 %403, %v383_v7  }
  0x12   :  { %186 = vperm.xlu1 %404, %v384_v8   ;;  %124 = vrot.lane.b32.xlu0 %v460_v5, %s407_s2 }
  0x16   :  { %144 = vrot.lane.b32.xlu1 %v460_v5, %s408_s0  ;;  %142 = vrot.lane.b32.xlu0 %v465_v6, %s408_s0 }
  0x1a   :  { %162 = vrot.lane.b32.xlu1 %v465_v6, %s409_s12  ;;  %206 = vperm.xlu0 %403, %v385_v9  }
  0x1e   :  { %226 = vperm.xlu1 %404, %v386_v10   ;;  %164 = vrot.lane.b32.xlu0 %v460_v5, %s409_s12 }
  0x22   :  { %193 = vrot.lane.b32.xlu1 %v465_v6, %s410_s17  ;;  %246 = vperm.xlu0 %403, %v387_v11  }
  0x26   :  { %266 = vperm.xlu1 %404, %v388_v12   ;;  %195 = vrot.lane.b32.xlu0 %v460_v5, %s410_s17 }
  0x2a   :  { %215 = vrot.lane.b32.xlu1 %v460_v5, %s411_s20  ;;  %213 = vrot.lane.b32.xlu0 %v465_v6, %s411_s20 }
  0x2e   :  { %235 = vrot.lane.b32.xlu1 %v460_v5, %s412_s21  ;;  %233 = vrot.lane.b32.xlu0 %v465_v6, %s412_s21 }
  0x32   :  { %255 = vrot.lane.b32.xlu1 %v460_v5, %s413_s22  ;;  %253 = vrot.lane.b32.xlu0 %v465_v6, %s413_s22 }
  0x36   :  { %286 = vperm.xlu1 %404, %v278_v13   ;;  %281 = vperm.xlu0 %403, %v277_v14  }
  0x81   :  { %v136_v16 = vpop.permute.xlu1 %135  ;;  %v116_v17 = vpop.permute.xlu0 %115 }
  0x85   :  { %v156_v18 = vpop.permute.xlu1 %155  ;;  %v101_v19 = vpop.permute.xlu0 %100 }
  0x89   :  { %v106_v20 = vpop.permute.xlu1 %105  ;;  %v104_v22 = vpop.permute.xlu0 %103 }
  0x8a   :  { %v109_v35 = vsel %vm107_vm2, %v106_v20, %v104_v22  ;;  %v108_v37 = vsel %vm107_vm2, %v104_v22, %v106_v20  ;;  %vm289_vm2 = vcmask 64512  }
  0x8b   :  { %v110_v42 = vsel %vm527_vm4, %v109_v35, 0.0  ;;  %v111_v43 = vsel %vm531_vm5, %v108_v37, 0.0 }
  0x8c   :  { %v118_v51 = vmul.f32 %v116_v17, %v110_v42  ;;  %v119_v54 = vmul.f32 %v116_v17, %v111_v43 }
  0x8d   :  { %v123_v24 = vpop.permute.xlu1 %122  ;;  %v176_v25 = vpop.permute.xlu0 %175 }
  0x8e   :  { %v120_v63 = vadd.f32 %v118_v51, %v101_v19  ;;  %v121_v2 = vadd.f32 %v119_v54, %v101_v19 }
  0x91   :  { %v513_v28 = vpop.permute.xlu1 %186  ;;  %v125_v29 = vpop.permute.xlu0 %124 }
  0x92   :  { %v128_v41 = vsel %vm126_vm3, %v125_v29, %v123_v24  ;;  %v127_v52 = vsel %vm126_vm3, %v123_v24, %v125_v29  ;;  %v189_v24 = vmul.f32 %v513_v28, %v465_v6  ;;  %v190_v30 = vmul.f32 %v513_v28, %v460_v5 }
  0x93   :  { %v129_v46 = vsel %vm49_vm0, %v128_v41, 0.0  ;;  %v139_v59 = vmul.f32 %v136_v16, %v127_v52  ;;  %vm257_vm0 = vcmp.lt.s32.totalorder %v507_v23, 111 }
  0x94   :  { %v138_v57 = vmul.f32 %v136_v16, %v129_v46 }
  0x95   :  { %v145_v32 = vpop.permute.xlu1 %144  ;;  %v143_v33 = vpop.permute.xlu0 %142  ;;  %v141_v8 = vadd.f32 %v139_v59, %v121_v2 }
  0x96   :  { %v148_v45 = vsel %vm146_vm7, %v145_v32, %v143_v33  ;;  %v147_v48 = vsel %vm146_vm7, %v143_v33, %v145_v32  ;;  %v140_v4 = vadd.f32 %v138_v57, %v120_v63 }
  0x97   :  { %v149_v55 = vsel %vm551_vm9, %v148_v45, 0.0  ;;  %v150_v58 = vsel %vm557_vm10, %v147_v48, 0.0 }
  0x98   :  { %v158_v0 = vmul.f32 %v156_v18, %v149_v55  ;;  %v159_v3 = vmul.f32 %v156_v18, %v150_v58 }
  0x99   :  { %v163_v39 = vpop.permute.xlu1 %162  ;;  %v207_v40 = vpop.permute.xlu0 %206 }
  0x9a   :  { %v160_v12 = vadd.f32 %v158_v0, %v140_v4  ;;  %v161_v15 = vadd.f32 %v159_v3, %v141_v8 }
  0x9d   :  { %v227_v49 = vpop.permute.xlu1 %226  ;;  %v165_v50 = vpop.permute.xlu0 %164 }
  0x9e   :  { %v168_v53 = vsel %vm166_vm8, %v165_v50, %v163_v39  ;;  %v167_v56 = vsel %vm166_vm8, %v163_v39, %v165_v50 }
  0x9f   :  { %v169_v60 = vsel %vm517_vm1, %v168_v53, 0.0  ;;  %v170_v1 = vsel %vm531_vm5, %v167_v56, 0.0 }
  0xa0   :  { %v178_v7 = vmul.f32 %v176_v25, %v169_v60  ;;  %v179_v9 = vmul.f32 %v176_v25, %v170_v1  ;;  %v276_v60 = vld [vmem:[%s626_s3 + $0x8] sm:$0xff] }
  0xa1   :  { %v194_v61 = vpop.permute.xlu1 %193  ;;  %v247_v62 = vpop.permute.xlu0 %246 }
  0xa2   :  { %v180_v17 = vadd.f32 %v178_v7, %v160_v12  ;;  %v181_v19 = vadd.f32 %v179_v9, %v161_v15 }
  0xa4   :  { %v191_v34 = vadd.f32 %v189_v24, %v180_v17  ;;  %v192_v37 = vadd.f32 %v190_v30, %v181_v19 }
  0xa5   :  { %v267_v10 = vpop.permute.xlu1 %266  ;;  %v196_v11 = vpop.permute.xlu0 %195 }
  0xa6   :  { %v198_v13 = vsel %vm197_vm11, %v194_v61, %v196_v11  ;;  %v199_v14 = vsel %vm197_vm11, %v196_v11, %v194_v61 }
  0xa7   :  { %v200_v16 = vsel %vm535_vm6, %v198_v13, 0.0  ;;  %v201_v20 = vsel %vm557_vm10, %v199_v14, 0.0 }
  0xa8   :  { %v209_v25 = vmul.f32 %v207_v40, %v200_v16  ;;  %v210_v35 = vmul.f32 %v207_v40, %v201_v20 }
  0xa9   :  { %v216_v21 = vpop.permute.xlu1 %215  ;;  %v214_v22 = vpop.permute.xlu0 %213 }
  0xaa   :  { %v218_v27 = vsel %vm217_vm13, %v214_v22, %v216_v21  ;;  %v219_v29 = vsel %vm217_vm13, %v216_v21, %v214_v22  ;;  %v211_v41 = vadd.f32 %v209_v25, %v191_v34  ;;  %v212_v28 = vadd.f32 %v210_v35, %v192_v37 }
  0xab   :  { %v220_v32 = vsel %vm517_vm1, %v218_v27, 0.0  ;;  %v221_v33 = vsel %vm580_vm14, %v219_v29, 0.0  ;;  %vm92_vm1 = vmand %vm52_vm12, %vm557_vm10 }
  0xac   :  { %v229_v36 = vmul.f32 %v227_v49, %v220_v32  ;;  %v230_v42 = vmul.f32 %v227_v49, %v221_v33 }
  0xad   :  { %v236_v39 = vpop.permute.xlu1 %235  ;;  %v234_v6 = vpop.permute.xlu0 %233 }
  0xae   :  { %v238_v43 = vsel %vm237_vm15, %v234_v6, %v236_v39  ;;  %v239_v44 = vsel %vm237_vm15, %v236_v39, %v234_v6  ;;  %v231_v31 = vadd.f32 %v229_v36, %v211_v41  ;;  %v232_v50 = vadd.f32 %v230_v42, %v212_v28 }
  0xaf   :  { %v241_v5 = vsel %vm52_vm12, %v239_v44, 0.0  ;;  %v249_v45 = vmul.f32 %v247_v62, %v238_v43 }
  0xb0   :  { %v250_v46 = vmul.f32 %v247_v62, %v241_v5 }
  0xb1   :  { %v256_v40 = vpop.permute.xlu1 %255  ;;  %v254_v48 = vpop.permute.xlu0 %253  ;;  %v251_v56 = vadd.f32 %v249_v45, %v231_v31 }
  0xb2   :  { %v258_v49 = vsel %vm257_vm0, %v254_v48, %v256_v40  ;;  %v259_v51 = vsel %vm257_vm0, %v256_v40, %v254_v48  ;;  %v252_v55 = vadd.f32 %v250_v46, %v232_v50 }
  0xb3   :  { %v260_v52 = vsel %vm535_vm6, %v258_v49, 0.0  ;;  %v261_v53 = vsel %vm92_vm1, %v259_v51, 0.0 }
  0xb4   :  { %v269_v54 = vmul.f32 %v267_v10, %v260_v52  ;;  %v270_v23 = vmul.f32 %v267_v10, %v261_v53 }
  0xb5   :  { %v287_v38 = vpop.permute.xlu1 %286  ;;  %v282_v61 = vpop.permute.xlu0 %281 }
  0xb6   :  { %v272_v57 = vadd.f32 %v270_v23, %v252_v55  ;;  %v271_v58 = vadd.f32 %v269_v54, %v251_v56 }
  0xb8   :  { %v274_v59 = vmax.f32 %v272_v57, 0.0  ;;  %v273_v47 = vmax.f32 %v271_v58, 0.0 }
  0xba   :  { %296 = vmatprep.subr.mxu0 %v274_v59  ;;  %391 = vmatprep.subr.mxu1 %v274_v59 }
  0xbb   :  { %297 = vmatpush1.msra.mxu0 %v273_v47  ;;  %392 = vmatpush1.msra.mxu1 %v273_v47 }
  0xbc   :  { %389 = vmatmul.mubr.msk.f32.vlgmr.msra.gmra.mrb[0].mxu0 %vm289_vm2, %v275_v26  ;;  %390 = vmatmul.mubr.msk.f32.vlgmr.msra.gmra.mrb[0].mxu1 %vm289_vm2, %v276_v60 }
 0x18f   :  { %v362_v62 = vpop.f32.mrb[0].mxu0  ;;  %v368_v63 = vpop.f32.mrb[0].mxu1 }
 0x190   :  { %v363_v0 = vadd.f32 %v362_v62, %v282_v61  ;;  %v369_v1 = vadd.f32 %v368_v63, %v287_v38  ;;  %v364_v2 = vpop.f32.mrb[1].mxu0  ;;  %v370_v3 = vpop.f32.mrb[1].mxu1 }
 0x191   :  { %v365_v4 = vadd.f32 %v364_v2, %v282_v61  ;;  %v371_v7 = vadd.f32 %v370_v3, %v287_v38 }
 0x192   :  { %373 = vst [vmem:[%s627_s5] sm:$0xff] %v363_v0  ;;  %375 = vst [vmem:[%s627_s5 + $0x10] sm:$0xff] %v369_v1 }
 0x193   :  { %374 = vst [vmem:[%s627_s5 + $0x8] sm:$0xff] %v365_v4  ;;  %376 = vst [vmem:[%s627_s5 + $0x18] sm:$0xff] %v371_v7 }

</bundles_post_ra>
